<compile_context>
chip_gen: v5e
topology: v5e:2x2
jax: 0.10.0
libtpu: 0.0.40
codegen_flags: <defaults>
</compile_context>

<pallas_src>
import numpy as np
import jax
import jax.numpy as jnp
from jax.experimental import pallas as pl
from jax.experimental.pallas import tpu as pltpu


def _pad8(n):
    return ((n + 7) // 8) * 8


def seq2seq_kernel(enc_x_ref, dec_x_ref, h0_ref, w_ref, fc_ref, out_ref):
    """Encoder recurrence -> decoder recurrence -> fc projection.

    enc_x_ref : (seq_e*B, n_class)        time-major flattened encoder input
    dec_x_ref : (seq_d*B, n_class)        time-major flattened decoder input
    h0_ref    : (B, n_hidden)             initial hidden state
    w_ref     : (112-ish, n_hidden)       packed [e_wih|e_whh|e_b|d_wih|d_whh|d_b],
                                          each piece padded to a multiple of 8 rows
    fc_ref    : (pad8(n_hidden)+8, 128k)  packed [fc_w (lane-padded) | fc_b]
    out_ref   : (seq_d*B, out_lanes)      lane-dense logits (zeros past n_class)
    """
    B, n_hidden = h0_ref.shape
    n_class = enc_x_ref.shape[1]
    seq_e = enc_x_ref.shape[0] // B
    seq_d = dec_x_ref.shape[0] // B

    # static row offsets into the packed rnn slab (mirror pack_rnn_slab)
    o_e_wih = 0
    o_e_whh = o_e_wih + _pad8(n_class)
    o_e_b = o_e_whh + _pad8(n_hidden)
    o_d_wih = o_e_b + _pad8(1)
    o_d_whh = o_d_wih + _pad8(n_class)
    o_d_b = o_d_whh + _pad8(n_hidden)

    # ---- hoisted weight loads: each read once, resident in vregs ------------
    e_wih = w_ref[o_e_wih:o_e_wih + n_class, :]
    e_whh = w_ref[o_e_whh:o_e_whh + n_hidden, :]
    e_b = w_ref[o_e_b:o_e_b + 1, :]
    d_wih = w_ref[o_d_wih:o_d_wih + n_class, :]
    d_whh = w_ref[o_d_whh:o_d_whh + n_hidden, :]
    d_b = w_ref[o_d_b:o_d_b + 1, :]
    fc_w = fc_ref[0:n_hidden, :]
    fc_b = fc_ref[_pad8(n_hidden):_pad8(n_hidden) + 1, :]

    # ---- hoisted input->hidden matmuls (one MXU call each, bias folded);
    #      results stay in vregs, no VMEM round trip -------------------------
    xe = jnp.dot(enc_x_ref[...], e_wih,
                 preferred_element_type=jnp.float32) + e_b   # (seq_e*B, H)
    xd = jnp.dot(dec_x_ref[...], d_wih,
                 preferred_element_type=jnp.float32) + d_b   # (seq_d*B, H)

    # ---- encoder recurrence: h stays in vregs, static unrolled loop ---------
    h = h0_ref[...]                                          # (B, n_hidden)
    for t in range(seq_e):
        h = jnp.tanh(
            xe[t * B:(t + 1) * B, :]
            + jnp.dot(h, e_whh, preferred_element_type=jnp.float32))

    # ---- decoder recurrence: collect hidden states in vregs -----------------
    hs = []
    for t in range(seq_d):
        h = jnp.tanh(
            xd[t * B:(t + 1) * B, :]
            + jnp.dot(h, d_whh, preferred_element_type=jnp.float32))
        hs.append(h)
    hall = jnp.concatenate(hs, axis=0)                       # (seq_d*B, H)

    # ---- single fc matmul + single lane-dense (unmasked) store --------------
    out_ref[...] = (
        jnp.dot(hall, fc_w, preferred_element_type=jnp.float32)
        + fc_b).astype(out_ref.dtype)


def pack_rnn_slab(e_wih, e_whh, e_b, d_wih, d_whh, d_b):
    """Pack RNN weights/biases into one sublane-aligned (rows, n_hidden) slab."""
    n_hidden = e_whh.shape[0]
    assert e_wih.shape[1] == n_hidden and d_wih.shape == e_wih.shape
    assert d_whh.shape == (n_hidden, n_hidden)
    assert e_b.shape == (1, n_hidden) and d_b.shape == (1, n_hidden)
    pieces = [e_wih, e_whh, e_b, d_wih, d_whh, d_b]
    rows = []
    for p in pieces:
        r = _pad8(p.shape[0])
        buf = jnp.zeros((r, n_hidden), jnp.float32).at[:p.shape[0], :].set(
            p.astype(jnp.float32))
        rows.append(buf)
    return jnp.concatenate(rows, axis=0)


def pack_fc_slab(fc_w, fc_b, out_lanes):
    """Pack lane-padded fc weight + bias into one slab: rows [W | b]."""
    n_hidden, n_class = fc_w.shape
    assert fc_b.shape == (1, n_class)
    w = jnp.zeros((_pad8(n_hidden), out_lanes), jnp.float32).at[
        :n_hidden, :n_class].set(fc_w.astype(jnp.float32))
    b = jnp.zeros((_pad8(1), out_lanes), jnp.float32).at[
        :1, :n_class].set(fc_b.astype(jnp.float32))
    return jnp.concatenate([w, b], axis=0)


def seq2seq_forward(enc_input, enc_hidden, dec_input, params):
    """Mirrors Seq2seq.forward.

    enc_input : (B, seq_e, n_class)  batch-major (as the PyTorch caller passes)
    enc_hidden: (1, B, n_hidden)
    dec_input : (B, seq_d, n_class)
    returns   : (seq_d, B, n_class)  time-major, like the PyTorch module
    """
    B, seq_e, n_class = enc_input.shape
    _, seq_d, _ = dec_input.shape
    n_hidden = enc_hidden.shape[-1]
    out_lanes = ((n_class + 127) // 128) * 128   # lane-dense output width

    # glue: transpose to time-major and flatten (seq, B) -> rows
    enc_x = jnp.transpose(enc_input, (1, 0, 2)).reshape(
        seq_e * B, n_class).astype(jnp.float32)
    dec_x = jnp.transpose(dec_input, (1, 0, 2)).reshape(
        seq_d * B, n_class).astype(jnp.float32)
    h0 = enc_hidden[0].astype(jnp.float32)                   # (B, n_hidden)

    rnn_slab = pack_rnn_slab(params["e_wih"], params["e_whh"], params["e_b"],
                             params["d_wih"], params["d_whh"], params["d_b"])
    fc_slab = pack_fc_slab(params["fc_w"], params["fc_b"], out_lanes)

    vmem = pl.BlockSpec(memory_space=pltpu.MemorySpace.VMEM)
    out_flat = pl.pallas_call(
        seq2seq_kernel,
        out_shape=jax.ShapeDtypeStruct((seq_d * B, out_lanes), jnp.float32),
        in_specs=[vmem] * 5,
        out_specs=vmem,
    )(enc_x, dec_x, h0, rnn_slab, fc_slab)

    return out_flat[:, :n_class].reshape(seq_d, B, n_class)


def reference_forward(enc_input, enc_hidden, dec_input, params):
    """Pure-JAX reference implementing the same Elman RNN math."""
    enc_x = jnp.transpose(enc_input, (1, 0, 2)).astype(jnp.float32)
    dec_x = jnp.transpose(dec_input, (1, 0, 2)).astype(jnp.float32)
    h = enc_hidden[0].astype(jnp.float32)

    for t in range(enc_x.shape[0]):
        h = jnp.tanh(enc_x[t] @ params["e_wih"] + h @ params["e_whh"]
                     + params["e_b"])
    outs = []
    for t in range(dec_x.shape[0]):
        h = jnp.tanh(dec_x[t] @ params["d_wih"] + h @ params["d_whh"]
                     + params["d_b"])
        outs.append(h @ params["fc_w"] + params["fc_b"])
    return jnp.stack(outs, axis=0)


def init_params(key, n_class, n_hidden):
    """Deterministic synthetic init (PyTorch-style uniform(-1/sqrt(H), 1/sqrt(H)))."""
    ks = jax.random.split(key, 8)
    bound = 1.0 / np.sqrt(n_hidden)
    u = lambda k, shape: jax.random.uniform(k, shape, jnp.float32, -bound, bound)
    return {
        "e_wih": u(ks[0], (n_class, n_hidden)),
        "e_whh": u(ks[1], (n_hidden, n_hidden)),
        "e_b":   u(ks[2], (1, n_hidden)),          # b_ih + b_hh folded together
        "d_wih": u(ks[3], (n_class, n_hidden)),
        "d_whh": u(ks[4], (n_hidden, n_hidden)),
        "d_b":   u(ks[5], (1, n_hidden)),
        "fc_w":  u(ks[6], (n_hidden, n_class)),
        "fc_b":  u(ks[7], (1, n_class)),
    }


if __name__ == "__main__":
    # Small shapes consistent with the module's forward:
    #   enc_input : (batch, enc_seq, n_class)
    #   enc_hidden: (1, batch, n_hidden)
    #   dec_input : (batch, dec_seq, n_class)
    batch, enc_seq, dec_seq = 2, 8, 8
    n_class, n_hidden = 16, 32

    key = jax.random.PRNGKey(0)
    k_enc, k_dec, k_h, k_p = jax.random.split(key, 4)

    enc_input = jax.random.normal(k_enc, (batch, enc_seq, n_class), jnp.float32)
    dec_input = jax.random.normal(k_dec, (batch, dec_seq, n_class), jnp.float32)
    enc_hidden = jax.random.normal(k_h, (1, batch, n_hidden), jnp.float32)
    params = init_params(k_p, n_class, n_hidden)

    out = seq2seq_forward(enc_input, enc_hidden, dec_input, params)
    out = jax.block_until_ready(out)

    ref = reference_forward(enc_input, enc_hidden, dec_input, params)
    if not np.allclose(np.asarray(out), np.asarray(ref), atol=1e-5, rtol=1e-5):
        raise AssertionError("Pallas kernel output mismatch vs JAX reference")

    assert out.shape == (dec_seq, batch, n_class)
    print("KERNEL_OK")
</pallas_src>

<mosaic_0001>
module attributes {stable_mosaic.version = 11 : i64} {
  func.func @seq2seq_kernel(%arg0: memref<16x16xf32, #tpu.memory_space<vmem>>, %arg1: memref<16x16xf32, #tpu.memory_space<vmem>>, %arg2: memref<2x32xf32, #tpu.memory_space<vmem>>, %arg3: memref<112x32xf32, #tpu.memory_space<vmem>>, %arg4: memref<40x128xf32, #tpu.memory_space<vmem>>, %arg5: memref<16x128xf32, #tpu.memory_space<vmem>>) attributes {dimension_semantics = [], scalar_prefetch = 0 : i64, scratch_operands = 0 : i64, tpu.core_type = #tpu.core_type<tc>} {
    %c0 = arith.constant 0 : index
    %c0_0 = arith.constant 0 : index
    %0 = vector.load %arg3[%c0, %c0_0] : memref<112x32xf32, #tpu.memory_space<vmem>>, vector<16x32xf32>
    %c16 = arith.constant 16 : index
    %c0_1 = arith.constant 0 : index
    %1 = vector.load %arg3[%c16, %c0_1] : memref<112x32xf32, #tpu.memory_space<vmem>>, vector<32x32xf32>
    %c48 = arith.constant 48 : index
    %c0_2 = arith.constant 0 : index
    %2 = vector.load %arg3[%c48, %c0_2] : memref<112x32xf32, #tpu.memory_space<vmem>>, vector<1x32xf32>
    %c56 = arith.constant 56 : index
    %c0_3 = arith.constant 0 : index
    %3 = vector.load %arg3[%c56, %c0_3] : memref<112x32xf32, #tpu.memory_space<vmem>>, vector<16x32xf32>
    %c72 = arith.constant 72 : index
    %c0_4 = arith.constant 0 : index
    %4 = vector.load %arg3[%c72, %c0_4] : memref<112x32xf32, #tpu.memory_space<vmem>>, vector<32x32xf32>
    %c104 = arith.constant 104 : index
    %c0_5 = arith.constant 0 : index
    %5 = vector.load %arg3[%c104, %c0_5] : memref<112x32xf32, #tpu.memory_space<vmem>>, vector<1x32xf32>
    %c0_6 = arith.constant 0 : index
    %c0_7 = arith.constant 0 : index
    %6 = vector.load %arg4[%c0_6, %c0_7] : memref<40x128xf32, #tpu.memory_space<vmem>>, vector<32x128xf32>
    %c32 = arith.constant 32 : index
    %c0_8 = arith.constant 0 : index
    %7 = vector.load %arg4[%c32, %c0_8] : memref<40x128xf32, #tpu.memory_space<vmem>>, vector<1x128xf32>
    %c0_9 = arith.constant 0 : index
    %c0_10 = arith.constant 0 : index
    %8 = vector.load %arg0[%c0_9, %c0_10] : memref<16x16xf32, #tpu.memory_space<vmem>>, vector<16x16xf32>
    %cst = arith.constant dense<0.000000e+00> : vector<16x32xf32>
    %9 = tpu.matmul %8, %0, %cst {dimension_numbers = #tpu.dot_dimension_numbers<[1], [0], [0], [1], [0, 0, 1, 1], [], []>} : vector<16x16xf32>, vector<16x32xf32>, vector<16x32xf32> -> vector<16x32xf32>
    %10 = vector.broadcast %2 : vector<1x32xf32> to vector<16x32xf32>
    %11 = arith.addf %9, %10 : vector<16x32xf32>
    %c0_11 = arith.constant 0 : index
    %c0_12 = arith.constant 0 : index
    %12 = vector.load %arg1[%c0_11, %c0_12] : memref<16x16xf32, #tpu.memory_space<vmem>>, vector<16x16xf32>
    %cst_13 = arith.constant dense<0.000000e+00> : vector<16x32xf32>
    %13 = tpu.matmul %12, %3, %cst_13 {dimension_numbers = #tpu.dot_dimension_numbers<[1], [0], [0], [1], [0, 0, 1, 1], [], []>} : vector<16x16xf32>, vector<16x32xf32>, vector<16x32xf32> -> vector<16x32xf32>
    %14 = vector.broadcast %5 : vector<1x32xf32> to vector<16x32xf32>
    %15 = arith.addf %13, %14 : vector<16x32xf32>
    %c0_14 = arith.constant 0 : index
    %c0_15 = arith.constant 0 : index
    %16 = vector.load %arg2[%c0_14, %c0_15] : memref<2x32xf32, #tpu.memory_space<vmem>>, vector<2x32xf32>
    %17 = vector.extract_strided_slice %11 {offsets = [0, 0], sizes = [2, 32], strides = [1, 1]} : vector<16x32xf32> to vector<2x32xf32>
    %cst_16 = arith.constant dense<0.000000e+00> : vector<2x32xf32>
    %18 = tpu.matmul %16, %1, %cst_16 {dimension_numbers = #tpu.dot_dimension_numbers<[1], [0], [0], [1], [0, 0, 1, 1], [], []>} : vector<2x32xf32>, vector<32x32xf32>, vector<2x32xf32> -> vector<2x32xf32>
    %19 = arith.addf %17, %18 : vector<2x32xf32>
    %20 = math.tanh %19 : vector<2x32xf32>
    %21 = vector.extract_strided_slice %11 {offsets = [2, 0], sizes = [2, 32], strides = [1, 1]} : vector<16x32xf32> to vector<2x32xf32>
    %cst_17 = arith.constant dense<0.000000e+00> : vector<2x32xf32>
    %22 = tpu.matmul %20, %1, %cst_17 {dimension_numbers = #tpu.dot_dimension_numbers<[1], [0], [0], [1], [0, 0, 1, 1], [], []>} : vector<2x32xf32>, vector<32x32xf32>, vector<2x32xf32> -> vector<2x32xf32>
    %23 = arith.addf %21, %22 : vector<2x32xf32>
    %24 = math.tanh %23 : vector<2x32xf32>
    %25 = vector.extract_strided_slice %11 {offsets = [4, 0], sizes = [2, 32], strides = [1, 1]} : vector<16x32xf32> to vector<2x32xf32>
    %cst_18 = arith.constant dense<0.000000e+00> : vector<2x32xf32>
    %26 = tpu.matmul %24, %1, %cst_18 {dimension_numbers = #tpu.dot_dimension_numbers<[1], [0], [0], [1], [0, 0, 1, 1], [], []>} : vector<2x32xf32>, vector<32x32xf32>, vector<2x32xf32> -> vector<2x32xf32>
    %27 = arith.addf %25, %26 : vector<2x32xf32>
    %28 = math.tanh %27 : vector<2x32xf32>
    %29 = vector.extract_strided_slice %11 {offsets = [6, 0], sizes = [2, 32], strides = [1, 1]} : vector<16x32xf32> to vector<2x32xf32>
    %cst_19 = arith.constant dense<0.000000e+00> : vector<2x32xf32>
    %30 = tpu.matmul %28, %1, %cst_19 {dimension_numbers = #tpu.dot_dimension_numbers<[1], [0], [0], [1], [0, 0, 1, 1], [], []>} : vector<2x32xf32>, vector<32x32xf32>, vector<2x32xf32> -> vector<2x32xf32>
    %31 = arith.addf %29, %30 : vector<2x32xf32>
    %32 = math.tanh %31 : vector<2x32xf32>
    %33 = vector.extract_strided_slice %11 {offsets = [8, 0], sizes = [2, 32], strides = [1, 1]} : vector<16x32xf32> to vector<2x32xf32>
    %cst_20 = arith.constant dense<0.000000e+00> : vector<2x32xf32>
    %34 = tpu.matmul %32, %1, %cst_20 {dimension_numbers = #tpu.dot_dimension_numbers<[1], [0], [0], [1], [0, 0, 1, 1], [], []>} : vector<2x32xf32>, vector<32x32xf32>, vector<2x32xf32> -> vector<2x32xf32>
    %35 = arith.addf %33, %34 : vector<2x32xf32>
    %36 = math.tanh %35 : vector<2x32xf32>
    %37 = vector.extract_strided_slice %11 {offsets = [10, 0], sizes = [2, 32], strides = [1, 1]} : vector<16x32xf32> to vector<2x32xf32>
    %cst_21 = arith.constant dense<0.000000e+00> : vector<2x32xf32>
    %38 = tpu.matmul %36, %1, %cst_21 {dimension_numbers = #tpu.dot_dimension_numbers<[1], [0], [0], [1], [0, 0, 1, 1], [], []>} : vector<2x32xf32>, vector<32x32xf32>, vector<2x32xf32> -> vector<2x32xf32>
    %39 = arith.addf %37, %38 : vector<2x32xf32>
    %40 = math.tanh %39 : vector<2x32xf32>
    %41 = vector.extract_strided_slice %11 {offsets = [12, 0], sizes = [2, 32], strides = [1, 1]} : vector<16x32xf32> to vector<2x32xf32>
    %cst_22 = arith.constant dense<0.000000e+00> : vector<2x32xf32>
    %42 = tpu.matmul %40, %1, %cst_22 {dimension_numbers = #tpu.dot_dimension_numbers<[1], [0], [0], [1], [0, 0, 1, 1], [], []>} : vector<2x32xf32>, vector<32x32xf32>, vector<2x32xf32> -> vector<2x32xf32>
    %43 = arith.addf %41, %42 : vector<2x32xf32>
    %44 = math.tanh %43 : vector<2x32xf32>
    %45 = vector.extract_strided_slice %11 {offsets = [14, 0], sizes = [2, 32], strides = [1, 1]} : vector<16x32xf32> to vector<2x32xf32>
    %cst_23 = arith.constant dense<0.000000e+00> : vector<2x32xf32>
    %46 = tpu.matmul %44, %1, %cst_23 {dimension_numbers = #tpu.dot_dimension_numbers<[1], [0], [0], [1], [0, 0, 1, 1], [], []>} : vector<2x32xf32>, vector<32x32xf32>, vector<2x32xf32> -> vector<2x32xf32>
    %47 = arith.addf %45, %46 : vector<2x32xf32>
    %48 = math.tanh %47 : vector<2x32xf32>
    %49 = vector.extract_strided_slice %15 {offsets = [0, 0], sizes = [2, 32], strides = [1, 1]} : vector<16x32xf32> to vector<2x32xf32>
    %cst_24 = arith.constant dense<0.000000e+00> : vector<2x32xf32>
    %50 = tpu.matmul %48, %4, %cst_24 {dimension_numbers = #tpu.dot_dimension_numbers<[1], [0], [0], [1], [0, 0, 1, 1], [], []>} : vector<2x32xf32>, vector<32x32xf32>, vector<2x32xf32> -> vector<2x32xf32>
    %51 = arith.addf %49, %50 : vector<2x32xf32>
    %52 = math.tanh %51 : vector<2x32xf32>
    %53 = vector.extract_strided_slice %15 {offsets = [2, 0], sizes = [2, 32], strides = [1, 1]} : vector<16x32xf32> to vector<2x32xf32>
    %cst_25 = arith.constant dense<0.000000e+00> : vector<2x32xf32>
    %54 = tpu.matmul %52, %4, %cst_25 {dimension_numbers = #tpu.dot_dimension_numbers<[1], [0], [0], [1], [0, 0, 1, 1], [], []>} : vector<2x32xf32>, vector<32x32xf32>, vector<2x32xf32> -> vector<2x32xf32>
    %55 = arith.addf %53, %54 : vector<2x32xf32>
    %56 = math.tanh %55 : vector<2x32xf32>
    %57 = vector.extract_strided_slice %15 {offsets = [4, 0], sizes = [2, 32], strides = [1, 1]} : vector<16x32xf32> to vector<2x32xf32>
    %cst_26 = arith.constant dense<0.000000e+00> : vector<2x32xf32>
    %58 = tpu.matmul %56, %4, %cst_26 {dimension_numbers = #tpu.dot_dimension_numbers<[1], [0], [0], [1], [0, 0, 1, 1], [], []>} : vector<2x32xf32>, vector<32x32xf32>, vector<2x32xf32> -> vector<2x32xf32>
    %59 = arith.addf %57, %58 : vector<2x32xf32>
    %60 = math.tanh %59 : vector<2x32xf32>
    %61 = vector.extract_strided_slice %15 {offsets = [6, 0], sizes = [2, 32], strides = [1, 1]} : vector<16x32xf32> to vector<2x32xf32>
    %cst_27 = arith.constant dense<0.000000e+00> : vector<2x32xf32>
    %62 = tpu.matmul %60, %4, %cst_27 {dimension_numbers = #tpu.dot_dimension_numbers<[1], [0], [0], [1], [0, 0, 1, 1], [], []>} : vector<2x32xf32>, vector<32x32xf32>, vector<2x32xf32> -> vector<2x32xf32>
    %63 = arith.addf %61, %62 : vector<2x32xf32>
    %64 = math.tanh %63 : vector<2x32xf32>
    %65 = vector.extract_strided_slice %15 {offsets = [8, 0], sizes = [2, 32], strides = [1, 1]} : vector<16x32xf32> to vector<2x32xf32>
    %cst_28 = arith.constant dense<0.000000e+00> : vector<2x32xf32>
    %66 = tpu.matmul %64, %4, %cst_28 {dimension_numbers = #tpu.dot_dimension_numbers<[1], [0], [0], [1], [0, 0, 1, 1], [], []>} : vector<2x32xf32>, vector<32x32xf32>, vector<2x32xf32> -> vector<2x32xf32>
    %67 = arith.addf %65, %66 : vector<2x32xf32>
    %68 = math.tanh %67 : vector<2x32xf32>
    %69 = vector.extract_strided_slice %15 {offsets = [10, 0], sizes = [2, 32], strides = [1, 1]} : vector<16x32xf32> to vector<2x32xf32>
    %cst_29 = arith.constant dense<0.000000e+00> : vector<2x32xf32>
    %70 = tpu.matmul %68, %4, %cst_29 {dimension_numbers = #tpu.dot_dimension_numbers<[1], [0], [0], [1], [0, 0, 1, 1], [], []>} : vector<2x32xf32>, vector<32x32xf32>, vector<2x32xf32> -> vector<2x32xf32>
    %71 = arith.addf %69, %70 : vector<2x32xf32>
    %72 = math.tanh %71 : vector<2x32xf32>
    %73 = vector.extract_strided_slice %15 {offsets = [12, 0], sizes = [2, 32], strides = [1, 1]} : vector<16x32xf32> to vector<2x32xf32>
    %cst_30 = arith.constant dense<0.000000e+00> : vector<2x32xf32>
    %74 = tpu.matmul %72, %4, %cst_30 {dimension_numbers = #tpu.dot_dimension_numbers<[1], [0], [0], [1], [0, 0, 1, 1], [], []>} : vector<2x32xf32>, vector<32x32xf32>, vector<2x32xf32> -> vector<2x32xf32>
    %75 = arith.addf %73, %74 : vector<2x32xf32>
    %76 = math.tanh %75 : vector<2x32xf32>
    %77 = vector.extract_strided_slice %15 {offsets = [14, 0], sizes = [2, 32], strides = [1, 1]} : vector<16x32xf32> to vector<2x32xf32>
    %cst_31 = arith.constant dense<0.000000e+00> : vector<2x32xf32>
    %78 = tpu.matmul %76, %4, %cst_31 {dimension_numbers = #tpu.dot_dimension_numbers<[1], [0], [0], [1], [0, 0, 1, 1], [], []>} : vector<2x32xf32>, vector<32x32xf32>, vector<2x32xf32> -> vector<2x32xf32>
    %79 = arith.addf %77, %78 : vector<2x32xf32>
    %80 = math.tanh %79 : vector<2x32xf32>
    %81 = tpu.concatenate %52, %56, %60, %64, %68, %72, %76, %80 in 0 : vector<2x32xf32>, vector<2x32xf32>, vector<2x32xf32>, vector<2x32xf32>, vector<2x32xf32>, vector<2x32xf32>, vector<2x32xf32>, vector<2x32xf32> -> vector<16x32xf32>
    %cst_32 = arith.constant dense<0.000000e+00> : vector<16x128xf32>
    %82 = tpu.matmul %81, %6, %cst_32 {dimension_numbers = #tpu.dot_dimension_numbers<[1], [0], [0], [1], [0, 0, 1, 1], [], []>} : vector<16x32xf32>, vector<32x128xf32>, vector<16x128xf32> -> vector<16x128xf32>
    %83 = vector.broadcast %7 : vector<1x128xf32> to vector<16x128xf32>
    %84 = arith.addf %82, %83 : vector<16x128xf32>
    %c0_33 = arith.constant 0 : index
    %c0_34 = arith.constant 0 : index
    %85 = vector.load %arg5[%c0_33, %c0_34] : memref<16x128xf32, #tpu.memory_space<vmem>>, vector<16x128xf32>
    tpu.vector_store %arg5[%c0_33, %c0_34], %84 {strides = array<i32>} : memref<16x128xf32, #tpu.memory_space<vmem>>, vector<16x128xf32>,
    return
  }
}

</mosaic_0001>

<bundles_post_ra>
// kernel: tpu_custom_call.1
= control target key start
LH: loop header
LB: loop body
LE: loop exit
PB: predicated region body
PF: predicated region fallthrough
CT: control target
= control target key end

     0   :  { %vm43_vm0 = vcmask 130048   ;;  %s880_s0 = inlined_call_operand.vmem [shape: f32[16,16], index: 0, kind: input, shape index: {}]   ;;  %s881_s1 = inlined_call_operand.vmem [shape: f32[16,16], index: 1, kind: input, shape index: {}]   ;;  %s882_s2 = inlined_call_operand.vmem [shape: f32[2,32], index: 2, kind: input, shape index: {}]   ;;  %s883_s3 = inlined_call_operand.vmem [shape: f32[112,32], index: 3, kind: input, shape index: {}]   ;;  %s884_s4 = inlined_call_operand.vmem [shape: f32[40,128], index: 4, kind: input, shape index: {}]   ;;  %s885_s5 = inlined_call_operand.hbm [shape: f32[16,128], index: 5, kind: output, shape index: {}]  }
   0x1   :  { %v737_v0 = vld [vmem:[%s883_s3 + $0x28] sm:$0xff]  ;;  %v742_v1 = vld [vmem:[%s883_s3 + $0x20] sm:$0xff]  ;;  %v748_v2 = vld [vmem:[%s883_s3 + $0x18] sm:$0xff] }
   0x2   :  { %122 = vmatpush.msra.mxu2 %v737_v0  ;;  %v22_v3 = vld [vmem:[%s883_s3 + $0x8] sm:$0xff]  ;;  %147 = vmatpush.msra.mxu3 %v737_v0  ;;  %v21_v4 = vld [vmem:[%s883_s3] sm:$0xff]  ;;  %v765_v6 = vld [vmem:[%s883_s3 + $0x10] sm:$0xff] }
   0x3   :  { %64 = vmatpush.msra.mxu0 %v22_v3  ;;  %v40_v5 = vld [vmem:[%s880_s0] sm:$0xff]  ;;  %635 = vmatpush.msra.mxu1 %v22_v3 }
   0x4   :  { %123 = vmatpush.msra.mxu2 %v742_v1  ;;  %148 = vmatpush.msra.mxu3 %v742_v1 }
   0x5   :  { %65 = vmatpush.msra.mxu0 %v21_v4  ;;  %636 = vmatpush.msra.mxu1 %v21_v4 }
   0x6   :  { %10 = vsyncpa [#allocation3], 0  ;;  %124 = vmatpush.msra.mxu2 %v748_v2  ;;  %v105_v7 = vld [vmem:[%s882_s2] sm:$0x3]  ;;  %vm106_vm1 = vcmask 261120   ;;  %613 = vmatmul.msk.f32.vlgmr.msra.gmra.mxu0 %vm43_vm0, %v40_v5  ;;  %v41_v24 = vld [vmem:[%s880_s0 + $0x8] sm:$0xff] }
   0x7   :  { %149 = vmatpush.msra.mxu3 %v748_v2  ;;  %234 = vmatpush.msrb.mxu0 %v737_v0  ;;  %v640_v8 = vld [vmem:[%s883_s3 + $0x30] ss:$0 sm:$0xff]  ;;  %v29_v25 = vld [vmem:[%s883_s3 + $0x40] sm:$0xff]  ;;  %v28_v26 = vld [vmem:[%s883_s3 + $0x38] sm:$0xff]  ;;  %vm554_vm2 = vcmask 1041408   ;;  %vm556_vm3 = vcmask 1043456  }
   0x8   :  { %125 = vmatpush.msra.mxu2 %v765_v6  ;;  %614 = vmatmul.msk.f32.vlgmr.msra.gmra.mxu1 %vm43_vm0, %v41_v24  ;;  %v73_v27 = vld [vmem:[%s881_s1] sm:$0xff]  ;;  %v74_v33 = vld [vmem:[%s881_s1 + $0x8] sm:$0xff]  ;;  %v32_v52 = vld [vmem:[%s883_s3 + $0x58] sm:$0xff]  ;;  %vm558_vm4 = vcmask 1045504   ;;  %s601_s14 = sshll.u32 %s885_s5, 4  ;;  %s702_s15 = smov 128   ;;  %s602_s14 = int_to_ptr.hbm [resolvable:$true] %s601_s14 }
   0x9   :  { %617 = vmatmul.msk.f32.vlgmr.msra.gmra.mxu2 %vm106_vm1, %v105_v7  ;;  %150 = vmatpush.msra.mxu3 %v765_v6  ;;  %v33_v51 = vld [vmem:[%s883_s3 + $0x60] sm:$0xff]  ;;  %v31_v53 = vld [vmem:[%s883_s3 + $0x50] sm:$0xff]  ;;  %v30_v54 = vld [vmem:[%s883_s3 + $0x48] sm:$0xff]  ;;  %s703_s16 = smov 8  }
   0xa   :  { %176 = vmatpush.msrb.mxu2 %v737_v0  ;;  %235 = vmatpush.msrb.mxu0 %v742_v1  ;;  %v641_v60 = vld [vmem:[%s883_s3 + $0x68] ss:$0 sm:$0xff] }
   0xb   :  { %205 = vmatpush.msrb.mxu3 %v737_v0  ;;  %96 = vmatpush.msrb.mxu1 %v29_v25 }
   0xc   :  { %177 = vmatpush.msrb.mxu2 %v742_v1  ;;  %236 = vmatpush.msrb.mxu0 %v748_v2 }
   0xd   :  { %206 = vmatpush.msrb.mxu3 %v742_v1  ;;  %97 = vmatpush.msrb.mxu1 %v28_v26  ;;  %v642_v26 = vld [vmem:[%s884_s4 + $0x20] ss:$0 sm:$0xff] }
   0xe   :  { %178 = vmatpush.msrb.mxu2 %v748_v2  ;;  %237 = vmatpush.msrb.mxu0 %v765_v6 }
   0xf   :  { %207 = vmatpush.msrb.mxu3 %v748_v2  ;;  %259 = vmatpush.msra.mxu1 %v737_v0 }
  0x10   :  { %179 = vmatpush.msrb.mxu2 %v765_v6  ;;  %615 = vmatmul.msk.f32.vlgmr.msrb.gmra.mxu1 %vm43_vm0, %v73_v27 }
  0x11   :  { %208 = vmatpush.msrb.mxu3 %v765_v6  ;;  %260 = vmatpush.msra.mxu1 %v742_v1 }
  0x12   :  { %288 = vmatpush.msra.mxu2 %v737_v0  ;;  %346 = vmatpush.msra.mxu0 %v33_v51 }
  0x13   :  { %261 = vmatpush.msra.mxu1 %v748_v2 }
  0x14   :  { %289 = vmatpush.msra.mxu2 %v742_v1  ;;  %347 = vmatpush.msra.mxu0 %v32_v52 }
  0x15   :  { %262 = vmatpush.msra.mxu1 %v765_v6 }
  0x16   :  { %290 = vmatpush.msra.mxu2 %v748_v2  ;;  %348 = vmatpush.msra.mxu0 %v31_v53 }
  0x17   :  { %371 = vmatpush.msrb.mxu1 %v33_v51 }
  0x18   :  { %291 = vmatpush.msra.mxu2 %v765_v6  ;;  %616 = vmatmul.msk.f32.gmra.mxu1 %vm43_vm0, %v74_v33 }
  0x19   :  { %372 = vmatpush.msrb.mxu1 %v32_v52  ;;  %349 = vmatpush.msra.mxu0 %v30_v54 }
  0x1b   :  { %373 = vmatpush.msrb.mxu1 %v31_v53 }
  0x1d   :  { %374 = vmatpush.msrb.mxu1 %v30_v54 }
  0x83   :  { %v67_v9 = vpop.f32.mrf.mxu0 }
  0x84   :  { %v68_v10 = vadd.f32 %v640_v8, %v67_v9 }
  0x85   :  { %v70_v34 = vpop.f32.mrf.mxu1 }
  0x86   :  { %v71_v35 = vadd.f32 %v640_v8, %v70_v34 }
  0x8c   :  { %v127_v11 = vpop.f32.mrf.mxu2 }
  0x8d   :  { %v130_v12 = vadd.f32 %v127_v11, %v68_v10  ;;  %v99_v39 = vpop.f32.mrf.mxu1 }
  0x8e   :  { %v100_v61 = vadd.f32 %v641_v60, %v99_v39 }
  0x8f   :  { %643 = vtanh.f32 %v130_v12 }
  0x95   :  { %v644_v13 = vpop.eup %643  ;;  %v826_v40 = vpop.f32.mrf.mxu1 }
  0x96   :  { %618 = vmatmul.msk.f32.vlgmr.msra.gmra.mxu3 %vm106_vm1, %v644_v13  ;;  %v38_v13 = vld [vmem:[%s884_s4 + $0x18] sm:$0xff] }
  0x97   :  { %317 = vmatpush.msra.mxu3 %v737_v0 }
  0x99   :  { %318 = vmatpush.msra.mxu3 %v742_v1 }
  0x9b   :  { %319 = vmatpush.msra.mxu3 %v748_v2 }
  0x9d   :  { %320 = vmatpush.msra.mxu3 %v765_v6 }
 0x119   :  { %v152_v14 = vpop.f32.mrf.mxu3 }
 0x11a   :  { %v156_v15 = vrot.slane %v152_v14, 6  ;;  %v37_v14 = vld [vmem:[%s884_s4 + $0x10] sm:$0xff] }
 0x11c   :  { %v158_v16 = vadd.f32 %v156_v15, %v68_v10  ;;  %v36_v15 = vld [vmem:[%s884_s4 + $0x8] sm:$0xff] }
 0x11e   :  { %645 = vtanh.f32 %v158_v16  ;;  %v35_v16 = vld [vmem:[%s884_s4] sm:$0xff]  ;;  %s701_s4 = smov [#allocation2]  }
 0x11f   :  { %s599_s11 = sshll.u32 %s701_s4, 4  ;;  %s600_s11 = int_to_ptr.vmem [resolvable:$true] %s599_s11 }
 0x124   :  { %v646_v17 = vpop.eup %645 }
 0x125   :  { %v161_v18 = vrot.slane %v646_v17, 2 }
 0x127   :  { %619 = vmatmul.msk.f32.vlgmr.msrb.gmra.mxu2 %vm106_vm1, %v161_v18 }
 0x128   :  { %400 = vmatpush.msrb.mxu2 %v33_v51 }
 0x12a   :  { %401 = vmatpush.msrb.mxu2 %v32_v52 }
 0x12c   :  { %402 = vmatpush.msrb.mxu2 %v31_v53 }
 0x12e   :  { %403 = vmatpush.msrb.mxu2 %v30_v54 }
 0x1aa   :  { %v181_v19 = vpop.f32.mrf.mxu2 }
 0x1ab   :  { %v185_v20 = vrot.slane %v181_v19, 4 }
 0x1ad   :  { %v187_v21 = vadd.f32 %v185_v20, %v68_v10 }
 0x1af   :  { %647 = vtanh.f32 %v187_v21 }
 0x1b5   :  { %v648_v22 = vpop.eup %647 }
 0x1b6   :  { %v190_v23 = vrot.slane %v648_v22, 4 }
 0x1b8   :  { %620 = vmatmul.msk.f32.vlgmr.msrb.gmra.mxu3 %vm106_vm1, %v190_v23  ;;  %v103_v23 = vadd.f32 %v641_v60, %v826_v40 }
 0x1b9   :  { %429 = vmatpush.msrb.mxu3 %v33_v51 }
 0x1bb   :  { %430 = vmatpush.msrb.mxu3 %v32_v52 }
 0x1bd   :  { %431 = vmatpush.msrb.mxu3 %v31_v53 }
 0x1bf   :  { %432 = vmatpush.msrb.mxu3 %v30_v54 }
 0x23b   :  { %v210_v28 = vpop.f32.mrf.mxu3 }
 0x23c   :  { %v214_v29 = vrot.slane %v210_v28, 2 }
 0x23e   :  { %v216_v30 = vadd.f32 %v214_v29, %v68_v10 }
 0x240   :  { %649 = vtanh.f32 %v216_v30 }
 0x246   :  { %v650_v31 = vpop.eup %649 }
 0x247   :  { %v219_v32 = vrot.slane %v650_v31, 6 }
 0x249   :  { %621 = vmatmul.msk.f32.vlgmr.msrb.gmra.mxu0 %vm106_vm1, %v219_v32 }
 0x24a   :  { %458 = vmatpush.msrb.mxu0 %v33_v51 }
 0x24c   :  { %459 = vmatpush.msrb.mxu0 %v32_v52 }
 0x24e   :  { %460 = vmatpush.msrb.mxu0 %v31_v53 }
 0x250   :  { %461 = vmatpush.msrb.mxu0 %v30_v54 }
 0x2c6   :  { %v239_v36 = vpop.f32.mrf.mxu0 }
 0x2c7   :  { %v242_v37 = vadd.f32 %v239_v36, %v71_v35 }
 0x2c9   :  { %651 = vtanh.f32 %v242_v37 }
 0x2cf   :  { %v652_v38 = vpop.eup %651 }
 0x2d0   :  { %622 = vmatmul.msk.f32.vlgmr.msra.gmra.mxu1 %vm106_vm1, %v652_v38 }
 0x2d1   :  { %483 = vmatpush.msra.mxu1 %v33_v51 }
 0x2d3   :  { %484 = vmatpush.msra.mxu1 %v32_v52 }
 0x2d5   :  { %485 = vmatpush.msra.mxu1 %v31_v53 }
 0x2d7   :  { %486 = vmatpush.msra.mxu1 %v30_v54 }
 0x34d   :  { %v264_v41 = vpop.f32.mrf.mxu1 }
 0x34e   :  { %v268_v42 = vrot.slane %v264_v41, 6 }
 0x350   :  { %v270_v43 = vadd.f32 %v268_v42, %v71_v35 }
 0x352   :  { %653 = vtanh.f32 %v270_v43 }
 0x358   :  { %v654_v44 = vpop.eup %653 }
 0x359   :  { %v273_v45 = vrot.slane %v654_v44, 2 }
 0x35b   :  { %623 = vmatmul.msk.f32.vlgmr.msra.gmra.mxu2 %vm106_vm1, %v273_v45 }
 0x35c   :  { %512 = vmatpush.msra.mxu2 %v33_v51 }
 0x35e   :  { %513 = vmatpush.msra.mxu2 %v32_v52 }
 0x360   :  { %514 = vmatpush.msra.mxu2 %v31_v53 }
 0x362   :  { %515 = vmatpush.msra.mxu2 %v30_v54 }
 0x3de   :  { %v293_v46 = vpop.f32.mrf.mxu2 }
 0x3df   :  { %v297_v47 = vrot.slane %v293_v46, 4 }
 0x3e1   :  { %v299_v48 = vadd.f32 %v297_v47, %v71_v35 }
 0x3e3   :  { %655 = vtanh.f32 %v299_v48 }
 0x3e9   :  { %v656_v49 = vpop.eup %655 }
 0x3ea   :  { %v302_v50 = vrot.slane %v656_v49, 4 }
 0x3ec   :  { %624 = vmatmul.msk.f32.vlgmr.msra.gmra.mxu3 %vm106_vm1, %v302_v50 }
 0x3ed   :  { %541 = vmatpush.msra.mxu3 %v33_v51 }
 0x3ef   :  { %542 = vmatpush.msra.mxu3 %v32_v52 }
 0x3f1   :  { %543 = vmatpush.msra.mxu3 %v31_v53 }
 0x3f3   :  { %544 = vmatpush.msra.mxu3 %v30_v54 }
 0x46f   :  { %v322_v55 = vpop.f32.mrf.mxu3 }
 0x470   :  { %v326_v56 = vrot.slane %v322_v55, 2 }
 0x472   :  { %v328_v57 = vadd.f32 %v326_v56, %v71_v35 }
 0x474   :  { %657 = vtanh.f32 %v328_v57 }
 0x47a   :  { %v658_v58 = vpop.eup %657 }
 0x47b   :  { %v331_v59 = vrot.slane %v658_v58, 6 }
 0x47d   :  { %625 = vmatmul.msk.f32.vlgmr.msra.gmra.mxu0 %vm106_vm1, %v331_v59 }
 0x47e   :  { %582 = vmatpush.msra.mxu0 %v38_v13 }
 0x480   :  { %583 = vmatpush.msra.mxu0 %v37_v14 }
 0x482   :  { %584 = vmatpush.msra.mxu0 %v36_v15 }
 0x484   :  { %585 = vmatpush.msra.mxu0 %v35_v16 }
 0x4fa   :  { %v351_v62 = vpop.f32.mrf.mxu0 }
 0x4fb   :  { %v354_v63 = vadd.f32 %v351_v62, %v100_v61 }
 0x4fd   :  { %659 = vtanh.f32 %v354_v63 }
 0x503   :  { %v660_v0 = vpop.eup %659 }
 0x504   :  { %626 = vmatmul.msk.f32.vlgmr.msrb.gmra.mxu1 %vm106_vm1, %v660_v0 }
 0x581   :  { %v376_v1 = vpop.f32.mrf.mxu1 }
 0x582   :  { %v380_v2 = vrot.slane %v376_v1, 6 }
 0x584   :  { %v382_v3 = vadd.f32 %v380_v2, %v100_v61 }
 0x586   :  { %661 = vtanh.f32 %v382_v3 }
 0x58c   :  { %v662_v4 = vpop.eup %661 }
 0x58d   :  { %v385_v5 = vrot.slane %v662_v4, 2  ;;  %v555_v10 = vsel %vm554_vm2, %v660_v0, %v662_v4 }
 0x58f   :  { %627 = vmatmul.msk.f32.vlgmr.msrb.gmra.mxu2 %vm106_vm1, %v385_v5 }
 0x612   :  { %v405_v6 = vpop.f32.mrf.mxu2 }
 0x613   :  { %v409_v7 = vrot.slane %v405_v6, 4 }
 0x615   :  { %v411_v8 = vadd.f32 %v409_v7, %v100_v61 }
 0x617   :  { %663 = vtanh.f32 %v411_v8 }
 0x61d   :  { %v664_v9 = vpop.eup %663 }
 0x61e   :  { %v414_v11 = vrot.slane %v664_v9, 4  ;;  %v557_v12 = vsel %vm556_vm3, %v555_v10, %v664_v9 }
 0x620   :  { %628 = vmatmul.msk.f32.vlgmr.msrb.gmra.mxu3 %vm106_vm1, %v414_v11 }
 0x6a3   :  { %v434_v17 = vpop.f32.mrf.mxu3 }
 0x6a4   :  { %v438_v18 = vrot.slane %v434_v17, 2 }
 0x6a6   :  { %v440_v19 = vadd.f32 %v438_v18, %v100_v61 }
 0x6a8   :  { %665 = vtanh.f32 %v440_v19 }
 0x6ae   :  { %v666_v20 = vpop.eup %665 }
 0x6af   :  { %v443_v21 = vrot.slane %v666_v20, 6  ;;  %v559_v22 = vsel %vm558_vm4, %v557_v12, %v666_v20 }
 0x6b1   :  { %629 = vmatmul.msk.f32.vlgmr.msrb.gmra.mxu0 %vm106_vm1, %v443_v21 }
 0x6b9   :  { %633 = vmatmul.msk.f32.vlgmr.msra.gmra.mxu0 %vm106_vm1, %v559_v22 }
 0x72e   :  { %v463_v24 = vpop.f32.mrf.mxu0 }
 0x72f   :  { %v466_v25 = vadd.f32 %v463_v24, %v103_v23 }
 0x731   :  { %667 = vtanh.f32 %v466_v25 }
 0x736   :  { %v587_v27 = vpop.f32.mrf.mxu0 }
 0x737   :  { %v668_v28 = vpop.eup %667  ;;  %v588_v29 = vadd.f32 %v642_v26, %v587_v27 }
 0x738   :  { %630 = vmatmul.msk.f32.vlgmr.msra.gmra.mxu1 %vm106_vm1, %v668_v28 }
 0x739   :  { %593 = vst [vmem:[#allocation2] sm:$0xff] %v588_v29 }
 0x7b5   :  { %v488_v30 = vpop.f32.mrf.mxu1 }
 0x7b6   :  { %v492_v31 = vrot.slane %v488_v30, 6 }
 0x7b8   :  { %v494_v32 = vadd.f32 %v492_v31, %v103_v23 }
 0x7ba   :  { %669 = vtanh.f32 %v494_v32 }
 0x7c0   :  { %v670_v33 = vpop.eup %669 }
 0x7c1   :  { %v497_v34 = vrot.slane %v670_v33, 2  ;;  %v560_v39 = vsel %vm554_vm2, %v668_v28, %v670_v33 }
 0x7c3   :  { %631 = vmatmul.msk.f32.vlgmr.msra.gmra.mxu2 %vm106_vm1, %v497_v34 }
 0x846   :  { %v517_v35 = vpop.f32.mrf.mxu2 }
 0x847   :  { %v521_v36 = vrot.slane %v517_v35, 4 }
 0x849   :  { %v523_v37 = vadd.f32 %v521_v36, %v103_v23 }
 0x84b   :  { %671 = vtanh.f32 %v523_v37 }
 0x851   :  { %v672_v38 = vpop.eup %671 }
 0x852   :  { %v526_v40 = vrot.slane %v672_v38, 4  ;;  %v561_v41 = vsel %vm556_vm3, %v560_v39, %v672_v38 }
 0x854   :  { %632 = vmatmul.msk.f32.vlgmr.msra.gmra.mxu3 %vm106_vm1, %v526_v40 }
 0x8d7   :  { %v546_v42 = vpop.f32.mrf.mxu3 }
 0x8d8   :  { %v550_v43 = vrot.slane %v546_v42, 2 }
 0x8da   :  { %v552_v44 = vadd.f32 %v550_v43, %v103_v23 }
 0x8dc   :  { %673 = vtanh.f32 %v552_v44 }
 0x8e2   :  { %v674_v45 = vpop.eup %673 }
 0x8e3   :  { %v562_v46 = vsel %vm558_vm4, %v561_v41, %v674_v45 }
 0x8e4   :  { %634 = vmatmul.msk.f32.gmra.mxu0 %vm106_vm1, %v562_v46 }
 0x961   :  { %v590_v47 = vpop.f32.mrf.mxu0 }
 0x962   :  { %v591_v48 = vadd.f32 %v642_v26, %v590_v47 }
 0x964   :  { %594 = vst [vmem:[#allocation2 + $0x8] sm:$0xff] %v591_v48 }
 0x965   :  { %607 = dma.vmem_to_hbm [thread:$0]  %s600_s11, 256, %s602_s14, [#allocation3], %s702_s15, %s702_s15, %s703_s16  }
 0x966   :  { %699 = dma.done.wait [#allocation3], 256  }
 0x967   :  { %700 = vsyncadd [#allocation3], 4294967040 }
 0x968   :  { %612 = vsyncpa [#allocation3], 1 }

</bundles_post_ra>
